<compile_context>
chip_gen: v7x
topology: tpu7x:2x2x1
jax: 0.10.0
libtpu: 0.0.40
codegen_flags: <defaults>
</compile_context>

<pallas_src>
import functools

import jax
import jax.numpy as jnp
from jax.experimental import pallas as pl
from jax.experimental.pallas import tpu as pltpu


def _round_up(v, m):
    return (v + m - 1) // m * m


def _choose_tile_m(m, tm_max=1024):
    """Largest multiple-of-8 tile <= tm_max that divides round_up(m, 8).

    Prefers an even number of tiles so ("parallel",) splits evenly across the
    two TensorCores on v7x; a single tile is also fine (nothing to balance).
    """
    m8 = _round_up(m, 8)
    cap = min(tm_max, m8)
    cap -= cap % 8
    best_odd = None
    for t in range(cap, 7, -8):
        if m8 % t == 0:
            n = m8 // t
            if n == 1 or n % 2 == 0:
                return t
            if best_odd is None:
                best_odd = t
    return best_odd if best_odd is not None else 8


def _patch_embed_kernel(p_ref, w_ref, b_ref, o_ref):
    # p_ref: (TM, K)      bf16 patch tile, streamed over the M grid axis
    # w_ref: (K, N_pad)   bf16 weight, constant index_map -> resident
    # b_ref: (1, N_pad)   f32 bias, resident
    # o_ref: (TM, N_pad)  output tile written in the final token dtype
    acc = jnp.dot(p_ref[...], w_ref[...], preferred_element_type=jnp.float32)
    o_ref[...] = (acc + b_ref[...]).astype(o_ref.dtype)


def _im2col_bf16(x, kernel, stride, padding):
    """bf16 patch matrix (B*Ho*Wo, C*KH*KW); K ordered (c, kh, kw) to match
    PyTorch Conv2d weight.reshape(C_out, -1). Built channels-last so the
    inflated intermediate is produced directly in its final layout."""
    B, C, H, W = x.shape
    KH, KW = kernel
    SH, SW = stride
    PH, PW = padding
    Ho = (H + 2 * PH - KH) // SH + 1
    Wo = (W + 2 * PW - KW) // SW + 1
    x = x.astype(jnp.bfloat16)                           # cast once, before inflation
    x = jnp.pad(x, ((0, 0), (0, 0), (PH, PH), (PW, PW)))
    x = jnp.transpose(x, (0, 2, 3, 1))                   # (B, Hp, Wp, C) channels-last
    taps = []
    for kh in range(KH):
        for kw in range(KW):
            taps.append(x[:, kh:kh + SH * Ho:SH, kw:kw + SW * Wo:SW, :])
    patches = jnp.stack(taps, axis=-1)                   # (B, Ho, Wo, C, KH*KW)
    patches = patches.reshape(B * Ho * Wo, C * KH * KW)  # K index = c*KH*KW + kh*KW + kw
    return patches, (Ho, Wo)


@functools.partial(jax.jit, static_argnums=(3, 4, 5))
def _patch_embed_tokens(x, weight, bias, kernel, stride, padding):
    B, C, H, W = x.shape
    C_out = weight.shape[0]

    patches, (Ho, Wo) = _im2col_bf16(x, kernel, stride, padding)
    M, K = patches.shape

    N_pad = _round_up(C_out, 128)      # lane-dense output stores (kept at 128 multiple)
    TM = _choose_tile_m(M)             # divides round_up(M, 8): no dead grid step
    M_pad = _round_up(M, TM)
    grid_m = M_pad // TM

    if M_pad != M:                     # at most 7 padded rows (only when M % 8 != 0)
        patches = jnp.pad(patches, ((0, M_pad - M), (0, 0)))

    # K stays at its natural size (full-array-dim blocks); only N is padded.
    w_mat = jnp.pad(weight.reshape(C_out, -1).T.astype(jnp.bfloat16),
                    ((0, 0), (0, N_pad - C_out)))
    b_mat = jnp.pad(bias.reshape(1, C_out).astype(jnp.float32),
                    ((0, 0), (0, N_pad - C_out)))

    out = pl.pallas_call(
        _patch_embed_kernel,
        out_shape=jax.ShapeDtypeStruct((M_pad, N_pad), x.dtype),
        grid_spec=pltpu.PrefetchScalarGridSpec(
            num_scalar_prefetch=0,
            grid=(grid_m,),
            in_specs=[
                pl.BlockSpec((TM, K), lambda i: (i, 0)),      # streamed patch tiles
                pl.BlockSpec((K, N_pad), lambda i: (0, 0)),   # weight: fetched once, resident
                pl.BlockSpec((1, N_pad), lambda i: (0, 0)),   # bias: resident
            ],
            out_specs=pl.BlockSpec((TM, N_pad), lambda i: (i, 0)),
        ),
        compiler_params=pltpu.CompilerParams(
            # Independent M tiles: shard across TensorCores on v7x, no-op on v5e/v6e.
            dimension_semantics=("parallel",),
        ),
    )(patches, w_mat, b_mat)

    tokens = out[:M, :C_out]
    return tokens.reshape(B, Ho * Wo, C_out)


def patch_embed_forward(x, weight, bias, kernel=(7, 7), stride=(4, 4), padding=(3, 3)):
    """x: (B, C_in, H, W). weight: (C_out, C_in, KH, KW). bias: (C_out,).
    Returns (tokens, conv_shape) matching PyTorch's
    `(x.flatten(2).transpose(1, 2), x.shape)` after the Conv2d projection."""
    B, _, H, W = x.shape
    C_out = weight.shape[0]
    Ho = (H + 2 * padding[0] - kernel[0]) // stride[0] + 1
    Wo = (W + 2 * padding[1] - kernel[1]) // stride[1] + 1
    tokens = _patch_embed_tokens(x, weight, bias, tuple(kernel), tuple(stride), tuple(padding))
    conv_shape = (B, C_out, Ho, Wo)
    return tokens, conv_shape


if __name__ == "__main__":
    key = jax.random.PRNGKey(0)
    k_x, k_w = jax.random.split(key, 2)

    B, C_in, H, W = 2, 4, 16, 16
    C_out = 32
    kernel, stride, padding = (7, 7), (4, 4), (3, 3)

    x = jax.random.normal(k_x, (B, C_in, H, W), jnp.float32)
    # Deterministic synthetic init (trunc-normal std=0.02, zero bias), same shapes as
    # nn.Conv2d(dim_in, dim_out, kernel_size=(7,7), stride=(4,4), padding=(3,3)).
    weight = 0.02 * jax.random.truncated_normal(
        k_w, -2.0, 2.0, (C_out, C_in) + kernel, jnp.float32)
    bias = jnp.zeros((C_out,), jnp.float32)

    tokens, conv_shape = patch_embed_forward(x, weight, bias, kernel, stride, padding)
    tokens = jax.block_until_ready(tokens)

    # Pure-JAX f32 reference for the same forward pass.
    ref_conv = jax.lax.conv_general_dilated(
        x, weight, window_strides=stride,
        padding=[(padding[0], padding[0]), (padding[1], padding[1])],
        dimension_numbers=("NCHW", "OIHW", "NCHW"),
    ) + bias.reshape(1, -1, 1, 1)
    ref_tokens = ref_conv.reshape(B, C_out, -1).transpose(0, 2, 1)

    assert conv_shape == tuple(ref_conv.shape), (conv_shape, ref_conv.shape)
    assert tokens.shape == ref_tokens.shape, (tokens.shape, ref_tokens.shape)
    # bf16 operands with f32 accumulation -> loosened tolerance vs the f32 reference.
    assert jnp.allclose(tokens, ref_tokens, atol=3e-2, rtol=3e-2)
    print("KERNEL_OK")
</pallas_src>

<mosaic_0001>
module attributes {stable_mosaic.version = 11 : i64} {
  func.func @_patch_embed_kernel(%arg0: i32, %arg1: memref<32x196xbf16, #tpu.memory_space<vmem>>, %arg2: memref<196x128xbf16, #tpu.memory_space<vmem>>, %arg3: memref<1x128xf32, #tpu.memory_space<vmem>>, %arg4: memref<32x128xf32, #tpu.memory_space<vmem>>) attributes {dimension_semantics = [#tpu.dimension_semantics<parallel>], iteration_bounds = array<i64: 1>, scalar_prefetch = 0 : i64, scratch_operands = 0 : i64, tpu.core_type = #tpu.core_type<tc>, window_params = [{transform_indices = @transform_0, window_bounds = array<i64: 32, 196>}, {pipeline_mode = #tpu.pipeline_mode<synchronous>, transform_indices = @transform_1, window_bounds = array<i64: 196, 128>}, {pipeline_mode = #tpu.pipeline_mode<synchronous>, transform_indices = @transform_2, window_bounds = array<i64: 1, 128>}, {transform_indices = @transform_3, window_bounds = array<i64: 32, 128>}]} {
    %c0 = arith.constant 0 : index
    %c0_0 = arith.constant 0 : index
    %0 = vector.load %arg1[%c0, %c0_0] : memref<32x196xbf16, #tpu.memory_space<vmem>>, vector<32x196xbf16>
    %c0_1 = arith.constant 0 : index
    %c0_2 = arith.constant 0 : index
    %1 = vector.load %arg2[%c0_1, %c0_2] : memref<196x128xbf16, #tpu.memory_space<vmem>>, vector<196x128xbf16>
    %cst = arith.constant dense<0.000000e+00> : vector<32x128xf32>
    %2 = tpu.matmul %0, %1, %cst {dimension_numbers = #tpu.dot_dimension_numbers<[1], [0], [0], [1], [0, 0, 1, 1], [], []>} : vector<32x196xbf16>, vector<196x128xbf16>, vector<32x128xf32> -> vector<32x128xf32>
    %c0_3 = arith.constant 0 : index
    %c0_4 = arith.constant 0 : index
    %3 = vector.load %arg3[%c0_3, %c0_4] : memref<1x128xf32, #tpu.memory_space<vmem>>, vector<1x128xf32>
    %4 = vector.broadcast %3 : vector<1x128xf32> to vector<32x128xf32>
    %5 = arith.addf %2, %4 : vector<32x128xf32>
    %c0_5 = arith.constant 0 : index
    %c0_6 = arith.constant 0 : index
    %6 = vector.load %arg4[%c0_5, %c0_6] : memref<32x128xf32, #tpu.memory_space<vmem>>, vector<32x128xf32>
    tpu.vector_store %arg4[%c0_5, %c0_6], %5 {strides = array<i32>} : memref<32x128xf32, #tpu.memory_space<vmem>>, vector<32x128xf32>,
    return
  }
  func.func @transform_0(%arg0: i32) -> (i32, i32) {
    %c0_i32 = arith.constant 0 : i32
    %c0_i32_0 = arith.constant 0 : i32
    return %arg0, %c0_i32 : i32, i32
  }
  func.func @transform_1(%arg0: i32) -> (i32, i32) {
    %c0_i32 = arith.constant 0 : i32
    %c0_i32_0 = arith.constant 0 : i32
    %c0_i32_1 = arith.constant 0 : i32
    return %c0_i32, %c0_i32_0 : i32, i32
  }
  func.func @transform_2(%arg0: i32) -> (i32, i32) {
    %c0_i32 = arith.constant 0 : i32
    %c0_i32_0 = arith.constant 0 : i32
    %c0_i32_1 = arith.constant 0 : i32
    return %c0_i32, %c0_i32_0 : i32, i32
  }
  func.func @transform_3(%arg0: i32) -> (i32, i32) {
    %c0_i32 = arith.constant 0 : i32
    %c0_i32_0 = arith.constant 0 : i32
    return %arg0, %c0_i32 : i32, i32
  }
}

</mosaic_0001>

<bundles_post_ra>
// kernel: _patch_embed_tokens.1
= control target key start
LH: loop header
LB: loop body
LE: loop exit
PB: predicated region body
PF: predicated region fallthrough
CT: control target
= control target key end

     0   :  { %v318_v1 = vmov 0   ;;  %vm145_vm0 = vcmask 556032   ;;  %s434_s0 = inlined_call_operand.vmem [shape: bf16[32,196], index: 0, kind: input, shape index: {}]   ;;  %s435_s1 = inlined_call_operand.vmem [shape: bf16[196,128], index: 1, kind: input, shape index: {}]   ;;  %s436_s2 = inlined_call_operand.vmem [shape: f32[1,128], index: 2, kind: input, shape index: {}]   ;;  %s437_s3 = inlined_call_operand.hbm [shape: f32[32,128], index: 3, kind: output, shape index: {}]  }
   0x1   :  { %v275_v0 = vld [vmem:[%s435_s1] sm:$0xff]   ;;  %156 = vmatprep.subr.bf16.mxu0 %v318_v1  ;;  %245 = vmatprep.subr.bf16.mxu1 %v318_v1  ;;  %v276_v2 = vld [vmem:[%s435_s1 + $0x8] sm:$0xff]   ;;  %v277_v3 = vld [vmem:[%s435_s1 + $0x10] sm:$0xff]  }
   0x2   :  { %157 = vmatpush1.bf16.msra.mxu0 %v275_v0  ;;  %258 = vmatpush1.bf16.msra.mxu1 %v275_v0  ;;  %v278_v4 = vld [vmem:[%s435_s1 + $0x18] sm:$0xff]   ;;  %v290_v5 = vld [vmem:[%s434_s0 + $0x4] ss:$8 sps:$4 sm:$0xff]  }
   0x3   :  { %158 = vmatprep.subr.bf16.mxu0 %v318_v1  ;;  %246 = vmatprep.subr.bf16.mxu1 %v318_v1  ;;  %v279_v6 = vld [vmem:[%s435_s1 + $0x20] sm:$0xff]   ;;  %v293_v7 = vld [vmem:[%s434_s0 + $0x14] ss:$8 sps:$4 sm:$0xff]  }
   0x6   :  { %159 = vmatpush1.bf16.msra.mxu0 %v276_v2  ;;  %259 = vmatpush1.bf16.msra.mxu1 %v276_v2 }
   0x7   :  { %160 = vmatprep.subr.bf16.mxu0 %v318_v1  ;;  %247 = vmatprep.subr.bf16.mxu1 %v318_v1 }
   0xa   :  { %161 = vmatpush1.bf16.msra.mxu0 %v277_v3  ;;  %260 = vmatpush1.bf16.msra.mxu1 %v277_v3 }
   0xb   :  { %162 = vmatprep.subr.bf16.mxu0 %v318_v1  ;;  %248 = vmatprep.subr.bf16.mxu1 %v318_v1 }
   0xe   :  { %163 = vmatpush1.bf16.msra.mxu0 %v278_v4  ;;  %261 = vmatpush1.bf16.msra.mxu1 %v278_v4 }
   0xf   :  { %164 = vmatprep.subr.bf16.mxu0 %v318_v1  ;;  %249 = vmatprep.subr.bf16.mxu1 %v318_v1 }
  0x10   :  { %8 = vsyncpa [#allocation3], 0  ;;  %243 = vmatprep.mubr.msk.bf16.mxu0 %vm145_vm0, %v290_v5  ;;  %244 = vmatprep.mubr.msk.bf16.mxu1 %vm145_vm0, %v293_v7  ;;  %v280_v8 = vld [vmem:[%s435_s1 + $0x28] sm:$0xff]   ;;  %v281_v9 = vld [vmem:[%s435_s1 + $0x30] sm:$0xff]   ;;  %vm152_vm1 = vcmask 1041408   ;;  %s319_s20 = smov [#allocation2]  }
  0x11   :  { %v282_v10 = vld [vmem:[%s435_s1 + $0x38] sm:$0xff]   ;;  %v283_v11 = vld [vmem:[%s435_s1 + $0x40] sm:$0xff]   ;;  %v284_v12 = vld [vmem:[%s435_s1 + $0x48] sm:$0xff]   ;;  %s214_s21 = sshll.u32 %s319_s20, 4  ;;  %s215_s21 = int_to_ptr.vmem [resolvable:$true] %s214_s21 }
  0x12   :  { %165 = vmatpush1.bf16.msra.mxu0 %v279_v6  ;;  %262 = vmatpush1.bf16.msra.mxu1 %v279_v6  ;;  %v285_v13 = vld [vmem:[%s435_s1 + $0x50] sm:$0xff]   ;;  %v286_v14 = vld [vmem:[%s435_s1 + $0x58] sm:$0xff]   ;;  %v287_v15 = vld [vmem:[%s435_s1 + $0x60] ss:$0 sps:$4 sm:$0x33]   ;;  %p299_p1 = scmp.lt.s32.totalorder %s215_s21, %s215_s21 }
  0x13   :  { %166 = vmatprep.subr.bf16.mxu0 %v318_v1  ;;  %250 = vmatprep.subr.bf16.mxu1 %v318_v1  ;;  %v154_v16 = vsel %vm152_vm1, %v287_v15, 0  ;;  %v288_v17 = vld [vmem:[%s434_s0] ss:$8 sps:$4 sm:$0xff]   ;;  %v291_v18 = vld [vmem:[%s434_s0 + $0x10] ss:$8 sps:$4 sm:$0xff]   ;;  %s294_s0 = scalar_lea.vmem %s215_s21, 512 }
  0x14   :  { %v225_v19 = vld [vmem:[%s436_s2] ss:$0 sm:$0xff]  ;;  %p295_p0 = scmp.ne.s32.totalorder %s215_s21, %s294_s0  ;;  %p300_p2 = scmp.lt.s32.totalorder %s294_s0, %s294_s0 }
  0x16   :  { %167 = vmatpush1.bf16.msra.mxu0 %v280_v8  ;;  %263 = vmatpush1.bf16.msra.mxu1 %v280_v8  ;;  %p301_p3 = por %p300_p2, %p299_p1 }
  0x17   :  { %168 = vmatprep.subr.bf16.mxu0 %v318_v1  ;;  %251 = vmatprep.subr.bf16.mxu1 %v318_v1 }
  0x18   :  { %p302_p4 = pnand %p301_p3, %p295_p0 }
  0x1a   :  { %169 = vmatpush1.bf16.msra.mxu0 %v281_v9  ;;  %264 = vmatpush1.bf16.msra.mxu1 %v281_v9 }
  0x1b   :  { %170 = vmatprep.subr.bf16.mxu0 %v318_v1  ;;  %252 = vmatprep.subr.bf16.mxu1 %v318_v1 }
  0x1e   :  { %171 = vmatpush1.bf16.msra.mxu0 %v282_v10  ;;  %265 = vmatpush1.bf16.msra.mxu1 %v282_v10 }
  0x1f   :  { %172 = vmatprep.subr.bf16.mxu0 %v318_v1  ;;  %253 = vmatprep.subr.bf16.mxu1 %v318_v1 }
  0x22   :  { %173 = vmatpush1.bf16.msra.mxu0 %v283_v11  ;;  %266 = vmatpush1.bf16.msra.mxu1 %v283_v11 }
  0x23   :  { %174 = vmatprep.subr.bf16.mxu0 %v318_v1  ;;  %254 = vmatprep.subr.bf16.mxu1 %v318_v1 }
  0x26   :  { %175 = vmatpush1.bf16.msra.mxu0 %v284_v12  ;;  %267 = vmatpush1.bf16.msra.mxu1 %v284_v12 }
  0x27   :  { %176 = vmatprep.subr.bf16.mxu0 %v318_v1  ;;  %255 = vmatprep.subr.bf16.mxu1 %v318_v1 }
  0x2a   :  { %177 = vmatpush1.bf16.msra.mxu0 %v285_v13  ;;  %268 = vmatpush1.bf16.msra.mxu1 %v285_v13 }
  0x2b   :  { %178 = vmatprep.subr.bf16.mxu0 %v318_v1  ;;  %256 = vmatprep.subr.bf16.mxu1 %v318_v1 }
  0x2e   :  { %179 = vmatpush1.bf16.msra.mxu0 %v286_v14  ;;  %269 = vmatpush1.bf16.msra.mxu1 %v286_v14 }
  0x2f   :  { %180 = vmatprep.subr.bf16.mxu0 %v318_v1  ;;  %257 = vmatprep.subr.bf16.mxu1 %v318_v1 }
  0x32   :  { %181 = vmatpush1.bf16.msra.mxu0 %v154_v16  ;;  %270 = vmatpush1.bf16.msra.mxu1 %v154_v16 }
  0x35   :  { %189 = vmatmul.mubr.bf16.vlgmr.msra.gmra.mrb[0].mxu0 %v288_v17  ;;  %197 = vmatmul.mubr.bf16.vlgmr.msra.gmra.mrb[0].mxu1 %v291_v18 }
 0x108   :  { %v190_v20 = vpop.f32.mrb[0].mxu0  ;;  %v198_v21 = vpop.f32.mrb[0].mxu1 }
 0x109   :  { %v191_v22 = vadd.f32 %v225_v19, %v190_v20  ;;  %v199_v23 = vadd.f32 %v225_v19, %v198_v21  ;;  %v192_v24 = vpop.f32.mrb[1].mxu0  ;;  %v200_v25 = vpop.f32.mrb[1].mxu1 }
 0x10a   :  { %v193_v26 = vpop.f32.mrb[2].mxu0  ;;  %v201_v27 = vpop.f32.mrb[2].mxu1 }
 0x10b   :  { %205 = vst [vmem:[#allocation2] sm:$0xff] %v191_v22  ;;  %207 = vst [vmem:[#allocation2 + $0x10] sm:$0xff] %v199_v23  ;;  %v194_v28 = vadd.f32 %v225_v19, %v193_v26  ;;  %v202_v29 = vadd.f32 %v225_v19, %v201_v27  ;;  %v195_v30 = vpop.f32.mrb[3].mxu0  ;;  %v203_v31 = vpop.f32.mrb[3].mxu1 }
 0x10d   :  { %206 = vst [vmem:[#allocation2 + $0x8] sm:$0xff] %v194_v28  ;;  %208 = vst [vmem:[#allocation2 + $0x18] sm:$0xff] %v202_v29 }
 0x10e   :  { %305 = shalt.err (!%p302_p4)
}
 0x10f   :  { %s306_s23 = scalar_lea.hbm %s437_s3, 512 }
 0x110   :  { %p307_p5 = scmp.ne.s32.totalorder %s437_s3, %s306_s23  ;;  %p310_p6 = scmp.lt.u32.totalorder %s306_s23, %s437_s3 }
 0x112   :  { %p312_p7 = pnand %p310_p6, %p307_p5 }
 0x114   :  { %315 = shalt.err (!%p312_p7)
}
 0x115   :  { %s320_s28 = smov 128   ;;  %s321_s29 = smov 8  }
 0x116   :  { %220 = dma.vmem_to_hbm [thread:$0]  %s215_s21, 512, %s437_s3, [#allocation3], %s320_s28, %s320_s28, %s321_s29  }
 0x117   :  { %316 = dma.done.wait [#allocation3], 512  }
 0x118   :  { %317 = vsyncadd [#allocation3], 4294966784 }
 0x119   :  { %224 = vsyncpa [#allocation3], 1 }

</bundles_post_ra>
